<compile_context>
chip_gen: v6e
topology: v6e:2x2x1
jax: 0.10.0
libtpu: 0.0.40
codegen_flags: <defaults>
</compile_context>

<pallas_src>
import functools

import numpy as np
import jax
import jax.numpy as jnp
from jax.experimental import pallas as pl
from jax.experimental.pallas import tpu as pltpu

BITS = 4                      # TODO(synk): real kernel also supports 2/8 bits; only 4-bit here.
MAXQ = (1 << BITS) - 1        # 15
PACK = 32 // BITS             # 8 nibbles per int32 word


# ----------------------------------------------------------------------------
# Per-generation VMEM budget
# ----------------------------------------------------------------------------
def _vmem_limit_bytes():
    cap = 64 * 1024 * 1024
    try:
        info = pltpu.get_tpu_info()
        cap = int(getattr(info, "vmem_capacity_bytes", cap) or cap)
    except Exception:
        pass
    # leave headroom for Mosaic internals; cap at ~100 MiB on 128 MiB parts.
    return int(min(cap - 16 * 1024 * 1024, 100 * 1024 * 1024))


# ----------------------------------------------------------------------------
# In-kernel dequant helpers
# ----------------------------------------------------------------------------
def _unpack_nibbles_i32(qw):
    """(rows, tn) uint32 packed -> (rows*8, tn) int32 raw nibbles 0..15."""
    rows, tn = qw.shape
    shifts = jax.lax.broadcasted_iota(jnp.uint32, (1, PACK, 1), 1) * jnp.uint32(BITS)
    nib = (qw[:, None, :] >> shifts) & jnp.uint32(MAXQ)          # (rows, 8, tn)
    # TODO(synk): verify via pl.lower_as_mlir that this sublane interleave lowers
    # without an extra relayout; if it does, repack qweight nibble order offline.
    return nib.astype(jnp.int32).reshape(rows * PACK, tn)


def _dequant_tile_bf16(qw, sc, zz, rows_per_group):
    """Whole-tile per-element dequant (prefill path).

    qw: (tk//8, tn) uint32, sc: (G_t, tn) f32, zz: (G_t, tn) int32 (zero+1).
    returns (tk, tn) bfloat16.
    """
    tn = qw.shape[1]
    g_t = sc.shape[0]
    nib = _unpack_nibbles_i32(qw).reshape(g_t, rows_per_group, tn)
    # 32-bit math (v5e VPU has no bf16); only the MXU operand is bf16.
    w = (nib - zz[:, None, :]).astype(jnp.float32) * sc[:, None, :]
    return w.reshape(g_t * rows_per_group, tn).astype(jnp.bfloat16)


def _quant_dot(x, qw, sc_ref, z_ref, k_step, *, group_size, tk, postscale):
    """f32 (tm, tn) contribution of one (tm, tk) x-chunk against one quantized weight."""
    tn = qw.shape[1]
    assert tk % group_size == 0 or group_size % tk == 0, (
        "tk must be a multiple of group_size or vice versa (sequential groups)")
    if tk % group_size == 0:
        gk, rows = tk // group_size, group_size
        first_group = k_step * gk
    else:                                   # group spans several k tiles
        gk, rows = 1, tk
        first_group = k_step // (group_size // tk)

    if not postscale:
        # Prefill: per-element dequant, one wide MXU dot (MXU is the binding unit).
        sc = sc_ref[pl.ds(first_group, gk), :]
        zz = z_ref[pl.ds(first_group, gk), :]
        w = _dequant_tile_bf16(qw, sc, zz, rows)
        return jnp.dot(x, w, preferred_element_type=jnp.float32)

    # Decode: per-group post-scaling of MXU partials — only shift/mask/cast per
    # weight element; scale & zero applied on (tm, tn)-sized corrections.
    acc = jnp.zeros((x.shape[0], tn), jnp.float32)
    for c in range(gk):
        x_c = x[:, c * rows:(c + 1) * rows]
        nib = _unpack_nibbles_i32(
            qw[c * (rows // PACK):(c + 1) * (rows // PACK), :]).astype(jnp.bfloat16)
        p = jnp.dot(x_c, nib, preferred_element_type=jnp.float32)         # (tm, tn)
        rs = jnp.sum(x_c.astype(jnp.float32), axis=1, keepdims=True)      # (tm, 1)
        sc = sc_ref[pl.ds(first_group + c, 1), :]                         # (1, tn)
        zz = z_ref[pl.ds(first_group + c, 1), :].astype(jnp.float32)      # (1, tn)
        acc = acc + (sc * p - (sc * zz) * rs)
    return acc


def _x_slice(x_ref, k_step, tk):
    start = k_step * tk
    if tk % 128 == 0:
        start = pl.multiple_of(start, 128)
    return x_ref[:, pl.ds(start, tk)]


# ----------------------------------------------------------------------------
# Kernels
# ----------------------------------------------------------------------------
def _fused_gate_up_kernel(x_ref, gqw_ref, gsc_ref, gz_ref,
                          uqw_ref, usc_ref, uz_ref, o_ref,
                          gacc_ref, uacc_ref, *, group_size, tk, postscale):
    k = pl.program_id(2)

    @pl.when(k == 0)
    def _():
        gacc_ref[...] = jnp.zeros_like(gacc_ref)
        uacc_ref[...] = jnp.zeros_like(uacc_ref)

    x = _x_slice(x_ref, k, tk)                                   # (tm, tk) bf16
    gacc_ref[...] += _quant_dot(x, gqw_ref[...], gsc_ref, gz_ref, k,
                                group_size=group_size, tk=tk, postscale=postscale)
    uacc_ref[...] += _quant_dot(x, uqw_ref[...], usc_ref, uz_ref, k,
                                group_size=group_size, tk=tk, postscale=postscale)

    @pl.when(k == pl.num_programs(2) - 1)
    def _():
        o_ref[...] = (jax.nn.silu(gacc_ref[...]) * uacc_ref[...]).astype(o_ref.dtype)


def _quant_matmul_kernel(x_ref, qw_ref, sc_ref, z_ref, o_ref, acc_ref,
                         *, group_size, tk, postscale):
    k = pl.program_id(2)

    @pl.when(k == 0)
    def _():
        acc_ref[...] = jnp.zeros_like(acc_ref)

    x = _x_slice(x_ref, k, tk)
    acc_ref[...] += _quant_dot(x, qw_ref[...], sc_ref, z_ref, k,
                               group_size=group_size, tk=tk, postscale=postscale)

    @pl.when(k == pl.num_programs(2) - 1)
    def _():
        o_ref[...] = acc_ref[...].astype(o_ref.dtype)


# ----------------------------------------------------------------------------
# Tile selection
# ----------------------------------------------------------------------------
def _round_up(v, m):
    return (v + m - 1) // m * m


def _padded_m(M):
    if M <= 512:
        return _round_up(max(M, 8), 8)
    return _round_up(M, 256)


def _pick_tm(M):
    if M <= 512:
        return M
    for t in (512, 256, 128, 64, 32, 16, 8):
        if M % t == 0:
            return t
    return M


def _pick_tn(N):
    for t in (512, 256, 128):
        if N % t == 0:
            return t
    return N


def _pick_tk(K, group_size, target=1024):
    if K % 128 != 0:
        return K                 # small / odd K: single K tile
    best = None
    t = 128
    while t <= min(K, target):
        if K % t == 0 and (t % group_size == 0 or group_size % t == 0):
            best = t
        t += 128
    # TODO(synk): for huge K with no suitable divisor <= target, add a remainder
    # tile instead of falling back to tk == K.
    return best if best is not None else K


# ----------------------------------------------------------------------------
# pallas_call wrappers
# ----------------------------------------------------------------------------
def fused_gate_up(x, gqw, gsc, gz, uqw, usc, uz, *, group_size):
    M, K = x.shape
    N = gsc.shape[1]
    G = K // group_size
    assert K % group_size == 0 and K % PACK == 0
    tm, tn, tk = _pick_tm(M), _pick_tn(N), _pick_tk(K, group_size)
    postscale = tm <= group_size          # decode-style small M
    grid = (M // tm, N // tn, K // tk)
    kernel = functools.partial(_fused_gate_up_kernel, group_size=group_size,
                               tk=tk, postscale=postscale)

    x_spec = pl.BlockSpec((tm, K), lambda i, j, k: (i, 0))        # resident over j, k
    w_spec = pl.BlockSpec((tk // PACK, tn), lambda i, j, k: (k, j))
    g_spec = pl.BlockSpec((G, tn), lambda i, j, k: (0, j))        # full-K scales/zeros
    # TODO(synk): for decode, fuse the down projection into this pallas_call
    # (keep silu(g)*u resident in VMEM) to kill the (M, N) HBM round trip.

    steps_m = M // tm
    bytes_accessed = (M * K * 2                                   # x: once per i tile
                      + steps_m * (gqw.size + uqw.size) * 4       # weights: once per i
                      + steps_m * (gsc.size + usc.size + gz.size + uz.size) * 4
                      + M * N * 2)
    cost = pl.CostEstimate(flops=4 * M * N * K + 4 * M * N,
                           transcendentals=M * N,
                           bytes_accessed=int(bytes_accessed))

    return pl.pallas_call(
        kernel,
        out_shape=jax.ShapeDtypeStruct((M, N), jnp.bfloat16),
        grid=grid,
        in_specs=[x_spec, w_spec, g_spec, g_spec, w_spec, g_spec, g_spec],
        out_specs=pl.BlockSpec((tm, tn), lambda i, j, k: (i, j)),
        scratch_shapes=[pltpu.VMEM((tm, tn), jnp.float32),
                        pltpu.VMEM((tm, tn), jnp.float32)],
        compiler_params=pltpu.CompilerParams(
            dimension_semantics=("parallel", "parallel", "arbitrary"),
            vmem_limit_bytes=_vmem_limit_bytes()),
        cost_estimate=cost,
    )(x, gqw, gsc, gz, uqw, usc, uz)


def quant_matmul(x, qw, sc, z, *, group_size, out_dtype=jnp.bfloat16):
    M, K = x.shape
    N = sc.shape[1]
    G = K // group_size
    assert K % group_size == 0 and K % PACK == 0
    tm, tn, tk = _pick_tm(M), _pick_tn(N), _pick_tk(K, group_size)
    postscale = tm <= group_size
    grid = (M // tm, N // tn, K // tk)
    kernel = functools.partial(_quant_matmul_kernel, group_size=group_size,
                               tk=tk, postscale=postscale)

    steps_m = M // tm
    bytes_accessed = (M * K * x.dtype.itemsize
                      + steps_m * (qw.size + sc.size + z.size) * 4
                      + M * N * jnp.dtype(out_dtype).itemsize)
    cost = pl.CostEstimate(flops=2 * M * N * K, transcendentals=0,
                           bytes_accessed=int(bytes_accessed))

    return pl.pallas_call(
        kernel,
        out_shape=jax.ShapeDtypeStruct((M, N), out_dtype),
        grid=grid,
        in_specs=[pl.BlockSpec((tm, K), lambda i, j, k: (i, 0)),
                  pl.BlockSpec((tk // PACK, tn), lambda i, j, k: (k, j)),
                  pl.BlockSpec((G, tn), lambda i, j, k: (0, j)),
                  pl.BlockSpec((G, tn), lambda i, j, k: (0, j))],
        out_specs=pl.BlockSpec((tm, tn), lambda i, j, k: (i, j)),
        scratch_shapes=[pltpu.VMEM((tm, tn), jnp.float32)],
        compiler_params=pltpu.CompilerParams(
            dimension_semantics=("parallel", "parallel", "arbitrary"),
            vmem_limit_bytes=_vmem_limit_bytes()),
        cost_estimate=cost,
    )(x, qw, sc, z)


def quant_llama_mlp(x, gate, up, down, *, out_dtype=jnp.bfloat16):
    """QuantLlamaMLP.forward: down_proj(silu(gate(x)) * up(x)). jit-safe."""
    lead = x.shape[:-1]
    K = x.shape[-1]
    x2 = x.reshape(-1, K).astype(jnp.bfloat16)
    M = x2.shape[0]
    Mp = _padded_m(M)
    if Mp != M:
        x2 = jnp.pad(x2, ((0, Mp - M), (0, 0)))

    gs_gate = K // gate["scales"].shape[0]
    gs_up = K // up["scales"].shape[0]
    assert gs_gate == gs_up, "gate/up must share a quantization group size"
    inter = fused_gate_up(x2,
                          gate["qweight"], gate["scales"], gate["zeros"],
                          up["qweight"], up["scales"], up["zeros"],
                          group_size=gs_gate)                     # (Mp, N) bf16
    N = inter.shape[1]
    gs_down = N // down["scales"].shape[0]
    out = quant_matmul(inter,
                       down["qweight"], down["scales"], down["zeros"],
                       group_size=gs_down, out_dtype=out_dtype)
    if Mp != M:
        out = out[:M]
    return out.reshape(*lead, out.shape[-1])


# ----------------------------------------------------------------------------
# Weight-load-time helpers (host side, run once — not in the forward)
# ----------------------------------------------------------------------------
def check_sequential_g_idx(g_idx, group_size, name="layer"):
    g = np.asarray(g_idx)
    expected = np.arange(g.shape[0]) // group_size
    if not np.array_equal(g, expected):
        # TODO(synk): act-order GPTQ (non-sequential g_idx) needs per-row gathers
        # of scales/zeros; not implemented.
        raise NotImplementedError(
            f"{name}: non-sequential g_idx (act-order GPTQ) is not supported")


def _unpack_zeros(qzeros):
    G, P = qzeros.shape
    parts = [((qzeros >> jnp.uint32(j * BITS)) & MAXQ) for j in range(PACK)]
    z = jnp.stack(parts, axis=-1).reshape(G, P * PACK)
    return z.astype(jnp.int32) + 1          # GPTQ kernels add 1 to unpacked zeros


def make_quant_linear(key, in_features, out_features, group_size):
    kq, kz, ks = jax.random.split(key, 3)
    G = in_features // group_size

    nib = jax.random.randint(kq, (in_features, out_features), 0, MAXQ + 1,
                             dtype=jnp.int32).astype(jnp.uint32)
    nib = nib.reshape(in_features // PACK, PACK, out_features)
    qweight = jnp.zeros((in_features // PACK, out_features), jnp.uint32)
    for j in range(PACK):
        qweight = qweight | (nib[:, j, :] << jnp.uint32(j * BITS))

    znib = jax.random.randint(kz, (G, out_features), 0, MAXQ + 1,
                              dtype=jnp.int32).astype(jnp.uint32)
    znib = znib.reshape(G, out_features // PACK, PACK)
    qzeros = jnp.zeros((G, out_features // PACK), jnp.uint32)
    for j in range(PACK):
        qzeros = qzeros | (znib[:, :, j] << jnp.uint32(j * BITS))

    scales = jax.random.uniform(ks, (G, out_features), jnp.float32,
                                minval=0.001, maxval=0.01)
    g_idx = jnp.arange(in_features, dtype=jnp.int32) // group_size   # sequential
    return {"qweight": qweight, "qzeros": qzeros, "scales": scales,
            "g_idx": g_idx, "zeros": _unpack_zeros(qzeros)}


# ----------------------------------------------------------------------------
# Pure-JAX reference (f32 dequant; bf16 x and bf16 intermediate like the kernel)
# ----------------------------------------------------------------------------
def _dequant_full_f32(qweight, scales, zeros, group_size):
    parts = [((qweight >> jnp.uint32(j * BITS)) & MAXQ) for j in range(PACK)]
    w = jnp.stack(parts, axis=1).reshape(qweight.shape[0] * PACK,
                                         qweight.shape[1]).astype(jnp.int32)
    z_full = jnp.repeat(zeros, group_size, axis=0)
    s_full = jnp.repeat(scales, group_size, axis=0)
    return (w - z_full).astype(jnp.float32) * s_full


def reference_mlp(x, gate, up, down):
    K = x.shape[-1]
    gs_gate = K // gate["scales"].shape[0]
    x2 = x.reshape(-1, K).astype(jnp.bfloat16).astype(jnp.float32)
    wg = _dequant_full_f32(gate["qweight"], gate["scales"], gate["zeros"], gs_gate)
    wu = _dequant_full_f32(up["qweight"], up["scales"], up["zeros"], gs_gate)
    hi = jax.lax.Precision.HIGHEST
    g = jnp.dot(x2, wg, precision=hi)
    u = jnp.dot(x2, wu, precision=hi)
    c = (jax.nn.silu(g) * u).astype(jnp.bfloat16).astype(jnp.float32)
    N = c.shape[-1]
    gs_down = N // down["scales"].shape[0]
    wd = _dequant_full_f32(down["qweight"], down["scales"], down["zeros"], gs_down)
    out = jnp.dot(c, wd, precision=hi)
    return out.reshape(*x.shape[:-1], -1)


if __name__ == "__main__":
    key = jax.random.PRNGKey(0)
    kg, ku, kd, kx1, kx2 = jax.random.split(key, 5)

    K = 128              # infeatures (hidden size)
    N = 256              # intermediate_size
    O = 128              # outfeatures
    group_size = 64

    gate = make_quant_linear(kg, K, N, group_size)
    up = make_quant_linear(ku, K, N, group_size)
    down = make_quant_linear(kd, N, O, group_size)
    for name, layer, gs in (("gate_proj", gate, group_size),
                            ("up_proj", up, group_size),
                            ("down_proj", down, group_size)):
        check_sequential_g_idx(layer["g_idx"], gs, name)   # load-time, not per-forward

    def run_and_check(x, tag):
        out = quant_llama_mlp(x, gate, up, down)
        out = jax.block_until_ready(out)
        ref = reference_mlp(x, gate, up, down)
        assert out.shape == ref.shape, (tag, out.shape, ref.shape)
        out_f32 = out.astype(jnp.float32)
        max_err = float(jnp.max(jnp.abs(out_f32 - ref)))
        if not jnp.allclose(out_f32, ref, rtol=1e-2, atol=2e-4):
            raise AssertionError(f"{tag}: mismatch vs reference, max abs err = {max_err:e}")

    # decode-like shape (small M -> per-group post-scaling path)
    x_small = jax.random.normal(kx1, (2, 8, K), jnp.float32) * 0.1
    run_and_check(x_small, "decode")

    # prefill-like shape (larger M -> per-element dequant, wide tm path)
    x_big = jax.random.normal(kx2, (2, 128, K), jnp.float32) * 0.1
    run_and_check(x_big, "prefill")

    print("KERNEL_OK")
</pallas_src>

<mosaic_0001>
module attributes {stable_mosaic.version = 11 : i64} {
  func.func @_fused_gate_up_kernel(%arg0: i32, %arg1: i32, %arg2: i32, %arg3: memref<16x128xbf16, #tpu.memory_space<vmem>>, %arg4: memref<16x256xi32, #tpu.memory_space<vmem>>, %arg5: memref<2x256xf32, #tpu.memory_space<vmem>>, %arg6: memref<2x256xi32, #tpu.memory_space<vmem>>, %arg7: memref<16x256xi32, #tpu.memory_space<vmem>>, %arg8: memref<2x256xf32, #tpu.memory_space<vmem>>, %arg9: memref<2x256xi32, #tpu.memory_space<vmem>>, %arg10: memref<16x256xbf16, #tpu.memory_space<vmem>>, %arg11: memref<16x256xf32, #tpu.memory_space<vmem>>, %arg12: memref<16x256xf32, #tpu.memory_space<vmem>>) attributes {dimension_semantics = [#tpu.dimension_semantics<parallel>, #tpu.dimension_semantics<parallel>, #tpu.dimension_semantics<arbitrary>], iteration_bounds = array<i64: 1, 1, 1>, scalar_prefetch = 0 : i64, scratch_operands = 2 : i64, tpu.core_type = #tpu.core_type<tc>, window_params = [{transform_indices = @transform_0, window_bounds = array<i64: 16, 128>}, {transform_indices = @transform_1, window_bounds = array<i64: 16, 256>}, {transform_indices = @transform_2, window_bounds = array<i64: 2, 256>}, {transform_indices = @transform_3, window_bounds = array<i64: 2, 256>}, {transform_indices = @transform_4, window_bounds = array<i64: 16, 256>}, {transform_indices = @transform_5, window_bounds = array<i64: 2, 256>}, {transform_indices = @transform_6, window_bounds = array<i64: 2, 256>}, {transform_indices = @transform_7, window_bounds = array<i64: 16, 256>}]} {
    %c0_i32 = arith.constant 0 : i32
    %0 = arith.cmpi eq, %arg2, %c0_i32 : i32
    %1 = arith.extui %0 : i1 to i32
    %c0_i32_0 = arith.constant 0 : i32
    %2 = arith.cmpi ne, %1, %c0_i32_0 : i32
    scf.if %2 {
      %cst_46 = arith.constant 0.000000e+00 : f32
      %150 = vector.broadcast %cst_46 : f32 to vector<16x256xf32>
      %c0_47 = arith.constant 0 : index
      %c0_48 = arith.constant 0 : index
      %151 = vector.load %arg11[%c0_47, %c0_48] : memref<16x256xf32, #tpu.memory_space<vmem>>, vector<16x256xf32>
      tpu.vector_store %arg11[%c0_47, %c0_48], %150 {strides = array<i32>} : memref<16x256xf32, #tpu.memory_space<vmem>>, vector<16x256xf32>,
      %cst_49 = arith.constant 0.000000e+00 : f32
      %152 = vector.broadcast %cst_49 : f32 to vector<16x256xf32>
      %c0_50 = arith.constant 0 : index
      %c0_51 = arith.constant 0 : index
      %153 = vector.load %arg12[%c0_50, %c0_51] : memref<16x256xf32, #tpu.memory_space<vmem>>, vector<16x256xf32>
      tpu.vector_store %arg12[%c0_50, %c0_51], %152 {strides = array<i32>} : memref<16x256xf32, #tpu.memory_space<vmem>>, vector<16x256xf32>,
    } else {
    }
    %c128_i32 = arith.constant 128 : i32
    %3 = arith.muli %arg2, %c128_i32 : i32
    %4 = tpu.assume_multiple %3, 128 : i32
    %c0 = arith.constant 0 : index
    %5 = arith.index_cast %4 : i32 to index
    %6 = vector.load %arg3[%c0, %5] : memref<16x128xbf16, #tpu.memory_space<vmem>>, vector<16x128xbf16>
    %c0_1 = arith.constant 0 : index
    %c0_2 = arith.constant 0 : index
    %7 = vector.load %arg11[%c0_1, %c0_2] : memref<16x256xf32, #tpu.memory_space<vmem>>, vector<16x256xf32>
    %c0_3 = arith.constant 0 : index
    %c0_4 = arith.constant 0 : index
    %8 = vector.load %arg4[%c0_3, %c0_4] : memref<16x256xi32, #tpu.memory_space<vmem>>, vector<16x256xi32>
    %c2_i32 = arith.constant 2 : i32
    %9 = arith.muli %arg2, %c2_i32 : i32
    %cst = arith.constant 0.000000e+00 : f32
    %10 = vector.broadcast %cst : f32 to vector<16x256xf32>
    %11 = vector.extract_strided_slice %6 {offsets = [0, 0], sizes = [16, 64], strides = [1, 1]} : vector<16x128xbf16> to vector<16x64xbf16>
    %12 = vector.extract_strided_slice %8 {offsets = [0, 0], sizes = [8, 256], strides = [1, 1]} : vector<16x256xi32> to vector<8x256xi32>
    %13 = tpu.iota {dimensions = array<i32: 1>} : vector<1x8x1xi32>
    %c4_i32 = arith.constant 4 : i32
    %14 = vector.broadcast %c4_i32 : i32 to vector<1x8x1xi32>
    %15 = arith.muli %13, %14 : vector<1x8x1xi32>
    %16 = vector.shape_cast %12 : vector<8x256xi32> to vector<8x1x256xi32>
    %17 = vector.broadcast %16 : vector<8x1x256xi32> to vector<8x8x256xi32>
    %18 = vector.broadcast %15 : vector<1x8x1xi32> to vector<8x8x256xi32>
    %19 = arith.shrui %17, %18 : vector<8x8x256xi32>
    %c15_i32 = arith.constant 15 : i32
    %20 = vector.broadcast %c15_i32 : i32 to vector<8x8x256xi32>
    %21 = arith.andi %19, %20 : vector<8x8x256xi32>
    %22 = vector.shape_cast %21 : vector<8x8x256xi32> to vector<64x256xi32>
    %23 = arith.sitofp %22 : vector<64x256xi32> to vector<64x256xbf16>
    %cst_5 = arith.constant dense<0.000000e+00> : vector<16x256xf32>
    %24 = tpu.matmul %11, %23, %cst_5 {dimension_numbers = #tpu.dot_dimension_numbers<[1], [0], [0], [1], [0, 0, 1, 1], [], []>} : vector<16x64xbf16>, vector<64x256xbf16>, vector<16x256xf32> -> vector<16x256xf32>
    %25 = arith.extf %11 : vector<16x64xbf16> to vector<16x64xf32>
    %cst_6 = arith.constant dense<0.000000e+00> : vector<16xf32>
    %26 = vector.multi_reduction <add>, %25, %cst_6 [1] : vector<16x64xf32> to vector<16xf32>
    %27 = vector.shape_cast %26 : vector<16xf32> to vector<16x1xf32>
    %c0_i32_7 = arith.constant 0 : i32
    %28 = arith.addi %9, %c0_i32_7 : i32
    %29 = arith.index_cast %28 : i32 to index
    %c0_8 = arith.constant 0 : index
    %30 = vector.load %arg5[%29, %c0_8] : memref<2x256xf32, #tpu.memory_space<vmem>>, vector<1x256xf32>
    %c0_i32_9 = arith.constant 0 : i32
    %31 = arith.addi %9, %c0_i32_9 : i32
    %32 = arith.index_cast %31 : i32 to index
    %c0_10 = arith.constant 0 : index
    %33 = vector.load %arg6[%32, %c0_10] : memref<2x256xi32, #tpu.memory_space<vmem>>, vector<1x256xi32>
    %34 = arith.sitofp %33 : vector<1x256xi32> to vector<1x256xf32>
    %35 = vector.broadcast %30 : vector<1x256xf32> to vector<16x256xf32>
    %36 = arith.mulf %35, %24 : vector<16x256xf32>
    %37 = arith.mulf %30, %34 : vector<1x256xf32>
    %38 = vector.broadcast %37 : vector<1x256xf32> to vector<16x256xf32>
    %39 = vector.broadcast %27 : vector<16x1xf32> to vector<16x256xf32>
    %40 = arith.mulf %38, %39 : vector<16x256xf32>
    %41 = arith.subf %36, %40 : vector<16x256xf32>
    %42 = arith.addf %10, %41 : vector<16x256xf32>
    %43 = vector.extract_strided_slice %6 {offsets = [0, 64], sizes = [16, 64], strides = [1, 1]} : vector<16x128xbf16> to vector<16x64xbf16>
    %44 = vector.extract_strided_slice %8 {offsets = [8, 0], sizes = [8, 256], strides = [1, 1]} : vector<16x256xi32> to vector<8x256xi32>
    %45 = tpu.iota {dimensions = array<i32: 1>} : vector<1x8x1xi32>
    %c4_i32_11 = arith.constant 4 : i32
    %46 = vector.broadcast %c4_i32_11 : i32 to vector<1x8x1xi32>
    %47 = arith.muli %45, %46 : vector<1x8x1xi32>
    %48 = vector.shape_cast %44 : vector<8x256xi32> to vector<8x1x256xi32>
    %49 = vector.broadcast %48 : vector<8x1x256xi32> to vector<8x8x256xi32>
    %50 = vector.broadcast %47 : vector<1x8x1xi32> to vector<8x8x256xi32>
    %51 = arith.shrui %49, %50 : vector<8x8x256xi32>
    %c15_i32_12 = arith.constant 15 : i32
    %52 = vector.broadcast %c15_i32_12 : i32 to vector<8x8x256xi32>
    %53 = arith.andi %51, %52 : vector<8x8x256xi32>
    %54 = vector.shape_cast %53 : vector<8x8x256xi32> to vector<64x256xi32>
    %55 = arith.sitofp %54 : vector<64x256xi32> to vector<64x256xbf16>
    %cst_13 = arith.constant dense<0.000000e+00> : vector<16x256xf32>
    %56 = tpu.matmul %43, %55, %cst_13 {dimension_numbers = #tpu.dot_dimension_numbers<[1], [0], [0], [1], [0, 0, 1, 1], [], []>} : vector<16x64xbf16>, vector<64x256xbf16>, vector<16x256xf32> -> vector<16x256xf32>
    %57 = arith.extf %43 : vector<16x64xbf16> to vector<16x64xf32>
    %cst_14 = arith.constant dense<0.000000e+00> : vector<16xf32>
    %58 = vector.multi_reduction <add>, %57, %cst_14 [1] : vector<16x64xf32> to vector<16xf32>
    %59 = vector.shape_cast %58 : vector<16xf32> to vector<16x1xf32>
    %c1_i32 = arith.constant 1 : i32
    %60 = arith.addi %9, %c1_i32 : i32
    %61 = arith.index_cast %60 : i32 to index
    %c0_15 = arith.constant 0 : index
    %62 = vector.load %arg5[%61, %c0_15] : memref<2x256xf32, #tpu.memory_space<vmem>>, vector<1x256xf32>
    %c1_i32_16 = arith.constant 1 : i32
    %63 = arith.addi %9, %c1_i32_16 : i32
    %64 = arith.index_cast %63 : i32 to index
    %c0_17 = arith.constant 0 : index
    %65 = vector.load %arg6[%64, %c0_17] : memref<2x256xi32, #tpu.memory_space<vmem>>, vector<1x256xi32>
    %66 = arith.sitofp %65 : vector<1x256xi32> to vector<1x256xf32>
    %67 = vector.broadcast %62 : vector<1x256xf32> to vector<16x256xf32>
    %68 = arith.mulf %67, %56 : vector<16x256xf32>
    %69 = arith.mulf %62, %66 : vector<1x256xf32>
    %70 = vector.broadcast %69 : vector<1x256xf32> to vector<16x256xf32>
    %71 = vector.broadcast %59 : vector<16x1xf32> to vector<16x256xf32>
    %72 = arith.mulf %70, %71 : vector<16x256xf32>
    %73 = arith.subf %68, %72 : vector<16x256xf32>
    %74 = arith.addf %42, %73 : vector<16x256xf32>
    %75 = arith.addf %7, %74 : vector<16x256xf32>
    %c0_18 = arith.constant 0 : index
    %c0_19 = arith.constant 0 : index
    %76 = vector.load %arg11[%c0_18, %c0_19] : memref<16x256xf32, #tpu.memory_space<vmem>>, vector<16x256xf32>
    tpu.vector_store %arg11[%c0_18, %c0_19], %75 {strides = array<i32>} : memref<16x256xf32, #tpu.memory_space<vmem>>, vector<16x256xf32>,
    %c0_20 = arith.constant 0 : index
    %c0_21 = arith.constant 0 : index
    %77 = vector.load %arg12[%c0_20, %c0_21] : memref<16x256xf32, #tpu.memory_space<vmem>>, vector<16x256xf32>
    %c0_22 = arith.constant 0 : index
    %c0_23 = arith.constant 0 : index
    %78 = vector.load %arg7[%c0_22, %c0_23] : memref<16x256xi32, #tpu.memory_space<vmem>>, vector<16x256xi32>
    %c2_i32_24 = arith.constant 2 : i32
    %79 = arith.muli %arg2, %c2_i32_24 : i32
    %cst_25 = arith.constant 0.000000e+00 : f32
    %80 = vector.broadcast %cst_25 : f32 to vector<16x256xf32>
    %81 = vector.extract_strided_slice %6 {offsets = [0, 0], sizes = [16, 64], strides = [1, 1]} : vector<16x128xbf16> to vector<16x64xbf16>
    %82 = vector.extract_strided_slice %78 {offsets = [0, 0], sizes = [8, 256], strides = [1, 1]} : vector<16x256xi32> to vector<8x256xi32>
    %83 = tpu.iota {dimensions = array<i32: 1>} : vector<1x8x1xi32>
    %c4_i32_26 = arith.constant 4 : i32
    %84 = vector.broadcast %c4_i32_26 : i32 to vector<1x8x1xi32>
    %85 = arith.muli %83, %84 : vector<1x8x1xi32>
    %86 = vector.shape_cast %82 : vector<8x256xi32> to vector<8x1x256xi32>
    %87 = vector.broadcast %86 : vector<8x1x256xi32> to vector<8x8x256xi32>
    %88 = vector.broadcast %85 : vector<1x8x1xi32> to vector<8x8x256xi32>
    %89 = arith.shrui %87, %88 : vector<8x8x256xi32>
    %c15_i32_27 = arith.constant 15 : i32
    %90 = vector.broadcast %c15_i32_27 : i32 to vector<8x8x256xi32>
    %91 = arith.andi %89, %90 : vector<8x8x256xi32>
    %92 = vector.shape_cast %91 : vector<8x8x256xi32> to vector<64x256xi32>
    %93 = arith.sitofp %92 : vector<64x256xi32> to vector<64x256xbf16>
    %cst_28 = arith.constant dense<0.000000e+00> : vector<16x256xf32>
    %94 = tpu.matmul %81, %93, %cst_28 {dimension_numbers = #tpu.dot_dimension_numbers<[1], [0], [0], [1], [0, 0, 1, 1], [], []>} : vector<16x64xbf16>, vector<64x256xbf16>, vector<16x256xf32> -> vector<16x256xf32>
    %95 = arith.extf %81 : vector<16x64xbf16> to vector<16x64xf32>
    %cst_29 = arith.constant dense<0.000000e+00> : vector<16xf32>
    %96 = vector.multi_reduction <add>, %95, %cst_29 [1] : vector<16x64xf32> to vector<16xf32>
    %97 = vector.shape_cast %96 : vector<16xf32> to vector<16x1xf32>
    %c0_i32_30 = arith.constant 0 : i32
    %98 = arith.addi %79, %c0_i32_30 : i32
    %99 = arith.index_cast %98 : i32 to index
    %c0_31 = arith.constant 0 : index
    %100 = vector.load %arg8[%99, %c0_31] : memref<2x256xf32, #tpu.memory_space<vmem>>, vector<1x256xf32>
    %c0_i32_32 = arith.constant 0 : i32
    %101 = arith.addi %79, %c0_i32_32 : i32
    %102 = arith.index_cast %101 : i32 to index
    %c0_33 = arith.constant 0 : index
    %103 = vector.load %arg9[%102, %c0_33] : memref<2x256xi32, #tpu.memory_space<vmem>>, vector<1x256xi32>
    %104 = arith.sitofp %103 : vector<1x256xi32> to vector<1x256xf32>
    %105 = vector.broadcast %100 : vector<1x256xf32> to vector<16x256xf32>
    %106 = arith.mulf %105, %94 : vector<16x256xf32>
    %107 = arith.mulf %100, %104 : vector<1x256xf32>
    %108 = vector.broadcast %107 : vector<1x256xf32> to vector<16x256xf32>
    %109 = vector.broadcast %97 : vector<16x1xf32> to vector<16x256xf32>
    %110 = arith.mulf %108, %109 : vector<16x256xf32>
    %111 = arith.subf %106, %110 : vector<16x256xf32>
    %112 = arith.addf %80, %111 : vector<16x256xf32>
    %113 = vector.extract_strided_slice %6 {offsets = [0, 64], sizes = [16, 64], strides = [1, 1]} : vector<16x128xbf16> to vector<16x64xbf16>
    %114 = vector.extract_strided_slice %78 {offsets = [8, 0], sizes = [8, 256], strides = [1, 1]} : vector<16x256xi32> to vector<8x256xi32>
    %115 = tpu.iota {dimensions = array<i32: 1>} : vector<1x8x1xi32>
    %c4_i32_34 = arith.constant 4 : i32
    %116 = vector.broadcast %c4_i32_34 : i32 to vector<1x8x1xi32>
    %117 = arith.muli %115, %116 : vector<1x8x1xi32>
    %118 = vector.shape_cast %114 : vector<8x256xi32> to vector<8x1x256xi32>
    %119 = vector.broadcast %118 : vector<8x1x256xi32> to vector<8x8x256xi32>
    %120 = vector.broadcast %117 : vector<1x8x1xi32> to vector<8x8x256xi32>
    %121 = arith.shrui %119, %120 : vector<8x8x256xi32>
    %c15_i32_35 = arith.constant 15 : i32
    %122 = vector.broadcast %c15_i32_35 : i32 to vector<8x8x256xi32>
    %123 = arith.andi %121, %122 : vector<8x8x256xi32>
    %124 = vector.shape_cast %123 : vector<8x8x256xi32> to vector<64x256xi32>
    %125 = arith.sitofp %124 : vector<64x256xi32> to vector<64x256xbf16>
    %cst_36 = arith.constant dense<0.000000e+00> : vector<16x256xf32>
    %126 = tpu.matmul %113, %125, %cst_36 {dimension_numbers = #tpu.dot_dimension_numbers<[1], [0], [0], [1], [0, 0, 1, 1], [], []>} : vector<16x64xbf16>, vector<64x256xbf16>, vector<16x256xf32> -> vector<16x256xf32>
    %127 = arith.extf %113 : vector<16x64xbf16> to vector<16x64xf32>
    %cst_37 = arith.constant dense<0.000000e+00> : vector<16xf32>
    %128 = vector.multi_reduction <add>, %127, %cst_37 [1] : vector<16x64xf32> to vector<16xf32>
    %129 = vector.shape_cast %128 : vector<16xf32> to vector<16x1xf32>
    %c1_i32_38 = arith.constant 1 : i32
    %130 = arith.addi %79, %c1_i32_38 : i32
    %131 = arith.index_cast %130 : i32 to index
    %c0_39 = arith.constant 0 : index
    %132 = vector.load %arg8[%131, %c0_39] : memref<2x256xf32, #tpu.memory_space<vmem>>, vector<1x256xf32>
    %c1_i32_40 = arith.constant 1 : i32
    %133 = arith.addi %79, %c1_i32_40 : i32
    %134 = arith.index_cast %133 : i32 to index
    %c0_41 = arith.constant 0 : index
    %135 = vector.load %arg9[%134, %c0_41] : memref<2x256xi32, #tpu.memory_space<vmem>>, vector<1x256xi32>
    %136 = arith.sitofp %135 : vector<1x256xi32> to vector<1x256xf32>
    %137 = vector.broadcast %132 : vector<1x256xf32> to vector<16x256xf32>
    %138 = arith.mulf %137, %126 : vector<16x256xf32>
    %139 = arith.mulf %132, %136 : vector<1x256xf32>
    %140 = vector.broadcast %139 : vector<1x256xf32> to vector<16x256xf32>
    %141 = vector.broadcast %129 : vector<16x1xf32> to vector<16x256xf32>
    %142 = arith.mulf %140, %141 : vector<16x256xf32>
    %143 = arith.subf %138, %142 : vector<16x256xf32>
    %144 = arith.addf %112, %143 : vector<16x256xf32>
    %145 = arith.addf %77, %144 : vector<16x256xf32>
    %c0_42 = arith.constant 0 : index
    %c0_43 = arith.constant 0 : index
    %146 = vector.load %arg12[%c0_42, %c0_43] : memref<16x256xf32, #tpu.memory_space<vmem>>, vector<16x256xf32>
    tpu.vector_store %arg12[%c0_42, %c0_43], %145 {strides = array<i32>} : memref<16x256xf32, #tpu.memory_space<vmem>>, vector<16x256xf32>,
    %c0_i32_44 = arith.constant 0 : i32
    %147 = arith.cmpi eq, %arg2, %c0_i32_44 : i32
    %148 = arith.extui %147 : i1 to i32
    %c0_i32_45 = arith.constant 0 : i32
    %149 = arith.cmpi ne, %148, %c0_i32_45 : i32
    scf.if %149 {
      %c0_46 = arith.constant 0 : index
      %c0_47 = arith.constant 0 : index
      %150 = vector.load %arg11[%c0_46, %c0_47] : memref<16x256xf32, #tpu.memory_space<vmem>>, vector<16x256xf32>
      %151 = arith.negf %150 : vector<16x256xf32>
      %152 = math.exp %151 : vector<16x256xf32>
      %cst_48 = arith.constant 1.000000e+00 : f32
      %153 = vector.broadcast %cst_48 : f32 to vector<16x256xf32>
      %154 = arith.addf %153, %152 : vector<16x256xf32>
      %155 = arith.divf %153, %154 : vector<16x256xf32>
      %156 = arith.mulf %150, %155 : vector<16x256xf32>
      %c0_49 = arith.constant 0 : index
      %c0_50 = arith.constant 0 : index
      %157 = vector.load %arg12[%c0_49, %c0_50] : memref<16x256xf32, #tpu.memory_space<vmem>>, vector<16x256xf32>
      %158 = arith.mulf %156, %157 : vector<16x256xf32>
      %159 = arith.truncf %158 : vector<16x256xf32> to vector<16x256xbf16>
      %c0_51 = arith.constant 0 : index
      %c0_52 = arith.constant 0 : index
      %160 = vector.load %arg10[%c0_51, %c0_52] : memref<16x256xbf16, #tpu.memory_space<vmem>>, vector<16x256xbf16>
      tpu.vector_store %arg10[%c0_51, %c0_52], %159 {strides = array<i32>} : memref<16x256xbf16, #tpu.memory_space<vmem>>, vector<16x256xbf16>,
    } else {
    }
    return
  }
  func.func @transform_0(%arg0: i32, %arg1: i32, %arg2: i32) -> (i32, i32) {
    %c0_i32 = arith.constant 0 : i32
    %c0_i32_0 = arith.constant 0 : i32
    return %arg0, %c0_i32 : i32, i32
  }
  func.func @transform_1(%arg0: i32, %arg1: i32, %arg2: i32) -> (i32, i32) {
    %c0_i32 = arith.constant 0 : i32
    return %arg2, %arg1 : i32, i32
  }
  func.func @transform_2(%arg0: i32, %arg1: i32, %arg2: i32) -> (i32, i32) {
    %c0_i32 = arith.constant 0 : i32
    %c0_i32_0 = arith.constant 0 : i32
    return %c0_i32, %arg1 : i32, i32
  }
  func.func @transform_3(%arg0: i32, %arg1: i32, %arg2: i32) -> (i32, i32) {
    %c0_i32 = arith.constant 0 : i32
    %c0_i32_0 = arith.constant 0 : i32
    return %c0_i32, %arg1 : i32, i32
  }
  func.func @transform_4(%arg0: i32, %arg1: i32, %arg2: i32) -> (i32, i32) {
    %c0_i32 = arith.constant 0 : i32
    return %arg2, %arg1 : i32, i32
  }
  func.func @transform_5(%arg0: i32, %arg1: i32, %arg2: i32) -> (i32, i32) {
    %c0_i32 = arith.constant 0 : i32
    %c0_i32_0 = arith.constant 0 : i32
    return %c0_i32, %arg1 : i32, i32
  }
  func.func @transform_6(%arg0: i32, %arg1: i32, %arg2: i32) -> (i32, i32) {
    %c0_i32 = arith.constant 0 : i32
    %c0_i32_0 = arith.constant 0 : i32
    return %c0_i32, %arg1 : i32, i32
  }
  func.func @transform_7(%arg0: i32, %arg1: i32, %arg2: i32) -> (i32, i32) {
    %c0_i32 = arith.constant 0 : i32
    return %arg0, %arg1 : i32, i32
  }
}

</mosaic_0001>

<bundles_post_ra>
// kernel: tpu_custom_call.1
= control target key start
LH: loop header
LB: loop body
LE: loop exit
PB: predicated region body
PF: predicated region fallthrough
CT: control target
= control target key end

     0   :  { %12 = vsyncpa [#allocation5], 0  ;;  %s1925_s0 = inlined_call_operand.hbm [shape: bf16[16,128], index: 0, kind: input, shape index: {}]   ;;  %s1926_s1 = inlined_call_operand.hbm [shape: u32[16,256], index: 1, kind: input, shape index: {}]   ;;  %s1927_s2 = inlined_call_operand.hbm [shape: f32[2,256], index: 2, kind: input, shape index: {}]   ;;  %s1928_s3 = inlined_call_operand.vmem [shape: s32[2,256], index: 3, kind: input, shape index: {}]   ;;  %s1929_s4 = inlined_call_operand.hbm [shape: u32[16,256], index: 4, kind: input, shape index: {}]   ;;  %s1930_s5 = inlined_call_operand.vmem [shape: f32[2,256], index: 5, kind: input, shape index: {}]   ;;  %s1931_s6 = inlined_call_operand.hbm [shape: s32[2,256], index: 6, kind: input, shape index: {}]   ;;  %s1932_s7 = inlined_call_operand.hbm [shape: bf16[16,256], index: 7, kind: output, shape index: {}]  }
   0x1   :  { %13 = vsyncpa [#allocation8], 0 }
   0x2   :  { %14 = vsyncpa [#allocation11], 0 }
   0x3   :  { %15 = vsyncpa [#allocation6], 0  ;;  %s1516_s24 = smov [#allocation7]  }
   0x4   :  { %s33_s25 = sshll.u32 %s1516_s24, 4  ;;  %s34_s25 = int_to_ptr.vmem [resolvable:$true] %s33_s25 }
   0x5   :  { %s1396_s26 = scalar_lea.vmem %s34_s25, 512  ;;  %p1401_p1 = scmp.lt.s32.totalorder %s34_s25, %s34_s25 }
   0x6   :  { %p1397_p0 = scmp.ne.s32.totalorder %s34_s25, %s1396_s26  ;;  %p1402_p2 = scmp.lt.s32.totalorder %s1396_s26, %s1396_s26 }
   0x8   :  { %p1403_p3 = por %p1402_p2, %p1401_p1 }
   0xa   :  { %p1404_p4 = pnand %p1403_p3, %p1397_p0 }
   0xc   :  { %1407 = shalt.err (!%p1404_p4)
}
   0xd   :  { %s1517_s27 = smov 256   ;;  %s1518_s28 = smov 16  }
   0xe   :  { %39 = dma.hbm_to_vmem [thread:$0]  %s1926_s1, 512, %s34_s25, [#allocation8], %s1517_s27, %s1517_s27, %s1518_s28  }
   0xf   :  { %s1519_s8 = smov [#allocation10]   ;;  %s1520_s10 = smov [#allocation4]  }
  0x10   :  { %s57_s9 = sshll.u32 %s1519_s8, 4  ;;  %s21_s11 = sshll.u32 %s1520_s10, 4  ;;  %s58_s9 = int_to_ptr.vmem [resolvable:$true] %s57_s9  ;;  %s22_s11 = int_to_ptr.vmem [resolvable:$true] %s21_s11 }
  0x11   :  { %s1416_s12 = scalar_lea.vmem %s58_s9, 512  ;;  %p1421_p6 = scmp.lt.s32.totalorder %s58_s9, %s58_s9 }
  0x12   :  { %p1417_p5 = scmp.ne.s32.totalorder %s58_s9, %s1416_s12  ;;  %p1422_p7 = scmp.lt.s32.totalorder %s1416_s12, %s1416_s12 }
  0x14   :  { %p1423_p8 = por %p1422_p7, %p1421_p6 }
  0x16   :  { %p1424_p9 = pnand %p1423_p8, %p1417_p5 }
  0x18   :  { %1427 = shalt.err (!%p1424_p9)
}
  0x19   :  { %63 = dma.hbm_to_vmem [thread:$0]  %s1929_s4, 512, %s58_s9, [#allocation11], %s1517_s27, %s1517_s27, %s1518_s28  }
  0x1a   :  { %s1436_s15 = scalar_lea.vmem %s22_s11, 128  ;;  %p1441_p11 = scmp.lt.s32.totalorder %s22_s11, %s22_s11 }
  0x1b   :  { %p1437_p10 = scmp.ne.s32.totalorder %s22_s11, %s1436_s15  ;;  %p1442_p12 = scmp.lt.s32.totalorder %s1436_s15, %s1436_s15 }
  0x1d   :  { %p1443_p13 = por %p1442_p12, %p1441_p11 }
  0x1f   :  { %p1444_p0 = pnand %p1443_p13, %p1437_p10 }
  0x21   :  { %1447 = shalt.err (!%p1444_p0)
}
  0x22   :  { %s1521_s1 = smov 64   ;;  %s1522_s16 = smov 4  }
  0x23   :  { %27 = dma.hbm_to_vmem [thread:$0]  %s1925_s0, 128, %s22_s11, [#allocation5], %s1521_s1, %s1521_s1, %s1522_s16  }
  0x24   :  { %s1523_s19 = smov [#allocation9]   ;;  %s1524_s4 = smov [#allocation12]  }
  0x25   :  { %s46_s20 = sshll.u32 %s1523_s19, 4  ;;  %s72_s21 = sshll.u32 %s1524_s4, 4  ;;  %s47_s20 = int_to_ptr.vmem [resolvable:$true] %s46_s20  ;;  %s73_s21 = int_to_ptr.vmem [resolvable:$true] %s72_s21 }
  0x26   :  { %s1456_s22 = scalar_lea.vmem %s47_s20, 64  ;;  %p1461_p2 = scmp.lt.s32.totalorder %s47_s20, %s47_s20 }
  0x27   :  { %p1457_p1 = scmp.ne.s32.totalorder %s47_s20, %s1456_s22  ;;  %p1462_p3 = scmp.lt.s32.totalorder %s1456_s22, %s1456_s22 }
  0x29   :  { %p1463_p4 = por %p1462_p3, %p1461_p2 }
  0x2b   :  { %p1464_p5 = pnand %p1463_p4, %p1457_p1 }
  0x2d   :  { %1467 = shalt.err (!%p1464_p5)
}
  0x2e   :  { %49 = dma.hbm_to_vmem [thread:$0]  %s1927_s2, 64, %s47_s20, [#allocation8]  }
  0x2f   :  { %s1476_s25 = scalar_lea.vmem %s73_s21, 64  ;;  %p1481_p7 = scmp.lt.s32.totalorder %s73_s21, %s73_s21 }
  0x30   :  { %p1477_p6 = scmp.ne.s32.totalorder %s73_s21, %s1476_s25  ;;  %p1482_p8 = scmp.lt.s32.totalorder %s1476_s25, %s1476_s25 }
  0x32   :  { %p1483_p9 = por %p1482_p8, %p1481_p7 }
  0x34   :  { %p1484_p10 = pnand %p1483_p9, %p1477_p6 }
  0x36   :  { %1487 = shalt.err (!%p1484_p10)
}
  0x37   :  { %75 = dma.hbm_to_vmem [thread:$0]  %s1931_s6, 64, %s73_s21, [#allocation11]  }
  0x38   :  { %1508 = dma.done.wait [#allocation5], 128  }
  0x39   :  { %1509 = vsyncadd [#allocation5], 4294967168 }
  0x3a   :  { %1510 = dma.done.wait [#allocation8], 576  }
  0x3b   :  { %1511 = vsyncadd [#allocation8], 4294966720 }
  0x3c   :  { %1512 = dma.done.wait [#allocation11], 576  }
  0x3d   :  { %1513 = vsyncadd [#allocation11], 4294966720  ;;  %v120_v0 = vlaneseq  ;;  %v1525_v1 = vmov 1966171168   ;;  %v1526_v3 = vmov 0   ;;  %v1591_v7 = vld [vmem:[#allocation4] sm:$0xff]  }
  0x3e   :  { %v126_v2 = vunpack.c.l.s4 %v1525_v1  ;;  %334 = vmatprep.mubr.bf16.mxu0 %v1526_v3  ;;  %609 = vmatprep.mubr.bf16.mxu1 %v1526_v3  ;;  %v345_v8 = vunpack.c.l.bf16 %v1591_v7  ;;  %v346_v9 = vunpack.c.h.bf16 %v1591_v7  ;;  %v1359_v10 = vld [vmem:[#allocation7] ss:$8 sps:$4 sm:$0xff]   ;;  %v1361_v11 = vld [vmem:[#allocation7 + $0x4] ss:$8 sps:$4 sm:$0xff]   ;;  %v1366_v17 = vld [vmem:[#allocation7 + $0x14] ss:$8 sps:$4 sm:$0xff]  }
  0x3f   :  { %v121_v4 = vshrl.u32 %v120_v0, 7  ;;  %v1362_v12 = vld [vmem:[#allocation10 + $0x4] ss:$8 sps:$4 sm:$0xff]   ;;  %572 = vrot.lane.b32.xlu0 %v1591_v7, %s1521_s1  ;;  %v1367_v21 = vld [vmem:[#allocation10] ss:$8 sps:$4 sm:$0xff]   ;;  %vm298_vm0 = vcmask 523264  }
  0x40   :  { %v127_v5 = vunpack.c.0.s8 %v126_v2  ;;  %v1353_v13 = vpack.i.bf16 %v346_v9, %v345_v8 }
  0x41   :  { %v1601_v14 = vmul.u32 4, %v121_v4  ;;  %v1605_v18 = vsub.s32 0, %v121_v4  ;;  %v1607_v19 = vsub.s32 1, %v121_v4 }
  0x42   :  { %v1589_v6 = vsub.s32 %v127_v5, %v121_v4 }
  0x43   :  { %1354 = vrot.lane.b32.xlu0 %v1353_v13, %s1521_s1 }
  0x44   :  { %v138_v15 = vrot.slane %v1361_v11, %v1589_v6  ;;  %v131_v16 = vrot.slane %v1359_v10, %v1589_v6  ;;  %v1610_v20 = vrot.slane %v1362_v12, %v1589_v6  ;;  %v1623_v28 = vrot.slane %v1366_v17, %v1589_v6 }
  0x45   :  { %v1626_v29 = vrot.slane %v1367_v21, %v1589_v6 }
  0x46   :  { %v140_v22 = vcombine.high %v138_v15, %v138_v15  ;;  %v154_v23 = vrot.slane %v138_v15, %v1589_v6  ;;  %v139_v24 = vcombine.high %v131_v16, %v131_v16  ;;  %v1614_v25 = vrot.slane %v131_v16, %v1589_v6 }
  0x47   :  { %v719_v26 = vcombine.high %v1610_v20, %v1610_v20  ;;  %v1620_v27 = vrot.slane %v1610_v20, %v1589_v6  ;;  %v1687_v20 = vrot.slane %v1623_v28, %v1589_v6 }
  0x48   :  { %v168_v30 = vrot.slane %v140_v22, %v1589_v6  ;;  %v170_v31 = vcombine.high %v154_v23, %v154_v23  ;;  %v212_v32 = vrot.slane %v154_v23, %v1607_v19  ;;  %v208_v33 = vrot.slane %v154_v23, %v1605_v18 }
  0x49   :  { %v1633_v34 = vrot.slane %v139_v24, %v1589_v6  ;;  %v169_v35 = vcombine.high %v1614_v25, %v1614_v25  ;;  %v180_v36 = vrot.slane %v1614_v25, %v1607_v19  ;;  %v176_v37 = vrot.slane %v1614_v25, %v1605_v18 }
  0x4a   :  { %v172_v38 = vcombine.high %v168_v30, %v168_v30  ;;  %v228_v39 = vrot.slane %v170_v31, %v1607_v19  ;;  %v224_v40 = vrot.slane %v170_v31, %v1605_v18  ;;  %v220_v41 = vrot.slane %v168_v30, %v1607_v19 }
  0x4b   :  { %v246_v42 = vshrl.u32 %v212_v32, %v1601_v14  ;;  %v216_v43 = vrot.slane %v168_v30, %v1605_v18  ;;  %v245_v44 = vshrl.u32 %v208_v33, %v1601_v14  ;;  %v171_v45 = vcombine.high %v1633_v34, %v1633_v34 }
  0x4c   :  { %v236_v46 = vrot.slane %v172_v38, %v1607_v19  ;;  %v250_v47 = vshrl.u32 %v228_v39, %v1601_v14  ;;  %v232_v48 = vrot.slane %v172_v38, %v1605_v18  ;;  %v249_v49 = vshrl.u32 %v224_v40, %v1601_v14 }
  0x4d   :  { %v248_v50 = vshrl.u32 %v220_v41, %v1601_v14  ;;  %v262_v51 = vand.u32 15, %v246_v42  ;;  %v247_v52 = vshrl.u32 %v216_v43, %v1601_v14  ;;  %v261_v53 = vand.u32 15, %v245_v44 }
  0x4e   :  { %v252_v54 = vshrl.u32 %v236_v46, %v1601_v14  ;;  %v266_v55 = vand.u32 15, %v250_v47  ;;  %v251_v56 = vshrl.u32 %v232_v48, %v1601_v14  ;;  %v265_v57 = vand.u32 15, %v249_v49 }
  0x4f   :  { %v264_v58 = vand.u32 15, %v248_v50  ;;  %v278_v59 = vcvt.s32.f32 %v262_v51  ;;  %v263_v60 = vand.u32 15, %v247_v52  ;;  %v277_v61 = vcvt.s32.f32 %v261_v53 }
  0x50   :  { %v268_v62 = vand.u32 15, %v252_v54  ;;  %v282_v63 = vcvt.s32.f32 %v266_v55  ;;  %v267_v0 = vand.u32 15, %v251_v56  ;;  %v281_v1 = vcvt.s32.f32 %v265_v57 }
  0x51   :  { %v280_v2 = vcvt.s32.f32 %v264_v58  ;;  %v279_v4 = vcvt.s32.f32 %v263_v60  ;;  %v196_v5 = vrot.slane %v169_v35, %v1607_v19  ;;  %v204_v10 = vrot.slane %v171_v45, %v1607_v19 }
  0x52   :  { %v284_v11 = vcvt.s32.f32 %v268_v62  ;;  %v283_v12 = vcvt.s32.f32 %v267_v0  ;;  %v192_v13 = vrot.slane %v169_v35, %v1605_v18  ;;  %v200_v15 = vrot.slane %v171_v45, %v1605_v18 }
  0x53   :  { %v290_v16 = vpack.c.bf16 %v280_v2, %v278_v59  ;;  %v289_v17 = vpack.c.bf16 %v279_v4, %v277_v61  ;;  %v242_v21 = vshrl.u32 %v196_v5, %v1601_v14  ;;  %v244_v22 = vshrl.u32 %v204_v10, %v1601_v14 }
  0x54   :  { %v292_v23 = vpack.c.bf16 %v284_v11, %v282_v63  ;;  %v291_v24 = vpack.c.bf16 %v283_v12, %v281_v1  ;;  %v241_v25 = vshrl.u32 %v192_v13, %v1601_v14  ;;  %v243_v30 = vshrl.u32 %v200_v15, %v1601_v14 }
  0x55   :  { %v258_v31 = vand.u32 15, %v242_v21  ;;  %v260_v32 = vand.u32 15, %v244_v22  ;;  %v188_v33 = vrot.slane %v1633_v34, %v1607_v19  ;;  %v238_v35 = vshrl.u32 %v180_v36, %v1601_v14 }
  0x56   :  { %310 = vmatprep.subr.bf16.mxu0 %v292_v23  ;;  %v257_v38 = vand.u32 15, %v241_v25  ;;  %v259_v39 = vand.u32 15, %v243_v30  ;;  %v184_v40 = vrot.slane %v1633_v34, %v1605_v18  ;;  %v237_v41 = vshrl.u32 %v176_v37, %v1601_v14 }
  0x57   :  { %311 = vmatpush1.bf16.msra.mxu0 %v291_v24  ;;  %v274_v42 = vcvt.s32.f32 %v258_v31  ;;  %v276_v43 = vcvt.s32.f32 %v260_v32  ;;  %v240_v44 = vshrl.u32 %v188_v33, %v1601_v14  ;;  %v254_v45 = vand.u32 15, %v238_v35 }
  0x58   :  { %312 = vmatprep.subr.bf16.mxu0 %v290_v16  ;;  %v273_v46 = vcvt.s32.f32 %v257_v38  ;;  %v275_v47 = vcvt.s32.f32 %v259_v39  ;;  %v239_v48 = vshrl.u32 %v184_v40, %v1601_v14  ;;  %v253_v36 = vand.u32 15, %v237_v41 }
  0x59   :  { %v288_v49 = vpack.c.bf16 %v276_v43, %v274_v42  ;;  %v256_v50 = vand.u32 15, %v240_v44  ;;  %v270_v51 = vcvt.s32.f32 %v254_v45  ;;  %v1677_v34 = vrot.slane %v719_v26, %v1589_v6 }
  0x5a   :  { %v287_v37 = vpack.c.bf16 %v275_v47, %v273_v46  ;;  %v255_v52 = vand.u32 15, %v239_v48  ;;  %v269_v53 = vcvt.s32.f32 %v253_v36  ;;  %v749_v54 = vcombine.high %v1620_v27, %v1620_v27 }
  0x5b   :  { %313 = vmatpush1.bf16.msra.mxu0 %v289_v17  ;;  %v272_v55 = vcvt.s32.f32 %v256_v50  ;;  %v751_v56 = vcombine.high %v1677_v34, %v1677_v34  ;;  %v419_v57 = vcombine.high %v1623_v28, %v1623_v28  ;;  %v791_v60 = vrot.slane %v1620_v27, %v1607_v19 }
  0x5c   :  { %314 = vmatprep.subr.bf16.mxu0 %v288_v49  ;;  %v271_v26 = vcvt.s32.f32 %v255_v52  ;;  %v807_v58 = vrot.slane %v749_v54, %v1607_v19  ;;  %v803_v59 = vrot.slane %v749_v54, %v1605_v18  ;;  %v449_v4 = vcombine.high %v1687_v20, %v1687_v20 }
  0x5d   :  { %v286_v61 = vpack.c.bf16 %v272_v55, %v270_v51  ;;  %v815_v62 = vrot.slane %v751_v56, %v1607_v19  ;;  %v811_v63 = vrot.slane %v751_v56, %v1605_v18  ;;  %v1696_v0 = vrot.slane %v419_v57, %v1589_v6 }
  0x5e   :  { %v285_v1 = vpack.c.bf16 %v271_v26, %v269_v53  ;;  %v829_v28 = vshrl.u32 %v807_v58, %v1601_v14  ;;  %v828_v2 = vshrl.u32 %v803_v59, %v1601_v14  ;;  %v799_v12 = vrot.slane %v1677_v34, %v1607_v19 }
  0x5f   :  { %315 = vmatpush1.bf16.msra.mxu0 %v287_v37  ;;  %v831_v5 = vshrl.u32 %v815_v62, %v1601_v14  ;;  %v830_v10 = vshrl.u32 %v811_v63, %v1601_v14  ;;  %v451_v11 = vcombine.high %v1696_v0, %v1696_v0  ;;  %v507_v16 = vrot.slane %v449_v4, %v1607_v19  ;;  %v1364_v63 = vld [vmem:[#allocation7 + $0x10] ss:$8 sps:$4 sm:$0xff]  }
  0x60   :  { %316 = vmatprep.subr.bf16.mxu0 %v286_v61  ;;  %v845_v13 = vand.u32 15, %v829_v28  ;;  %v844_v15 = vand.u32 15, %v828_v2  ;;  %v503_v17 = vrot.slane %v449_v4, %v1605_v18  ;;  %v825_v42 = vshrl.u32 %v791_v60, %v1601_v14 }
  0x61   :  { %v847_v21 = vand.u32 15, %v831_v5  ;;  %v846_v22 = vand.u32 15, %v830_v10  ;;  %v515_v23 = vrot.slane %v451_v11, %v1607_v19  ;;  %v511_v24 = vrot.slane %v451_v11, %v1605_v18 }
  0x62   :  { %v861_v25 = vcvt.s32.f32 %v845_v13  ;;  %v860_v30 = vcvt.s32.f32 %v844_v15  ;;  %v529_v31 = vshrl.u32 %v507_v16, %v1601_v14  ;;  %v528_v32 = vshrl.u32 %v503_v17, %v1601_v14 }
  0x63   :  { %317 = vmatpush1.bf16.msra.mxu0 %v285_v1  ;;  %v863_v33 = vcvt.s32.f32 %v847_v21  ;;  %v862_v35 = vcvt.s32.f32 %v846_v22  ;;  %v531_v38 = vshrl.u32 %v515_v23, %v1601_v14  ;;  %v530_v39 = vshrl.u32 %v511_v24, %v1601_v14 }
  0x64   :  { %v545_v40 = vand.u32 15, %v529_v31  ;;  %v544_v41 = vand.u32 15, %v528_v32  ;;  %v827_v43 = vshrl.u32 %v799_v12, %v1601_v14  ;;  %v841_v49 = vand.u32 15, %v825_v42 }
  0x65   :  { %v871_v44 = vpack.c.bf16 %v863_v33, %v861_v25  ;;  %v870_v45 = vpack.c.bf16 %v862_v35, %v860_v30  ;;  %v547_v46 = vand.u32 15, %v531_v38  ;;  %v546_v47 = vand.u32 15, %v530_v39 }
  0x66   :  { %1325 = vmatmul.mubr.msk.bf16.vlgmr.msra.gmra.mxu0 %vm298_vm0, %v1591_v7  ;;  %v561_v48 = vcvt.s32.f32 %v545_v40  ;;  %v560_v36 = vcvt.s32.f32 %v544_v41  ;;  %v843_v50 = vand.u32 15, %v827_v43  ;;  %v787_v52 = vrot.slane %v1620_v27, %v1605_v18 }
  0x67   :  { %880 = vmatprep.subr.bf16.mxu0 %v871_v44  ;;  %v563_v51 = vcvt.s32.f32 %v547_v46  ;;  %v562_v37 = vcvt.s32.f32 %v546_v47  ;;  %v795_v53 = vrot.slane %v1677_v34, %v1605_v18  ;;  %904 = vmatprep.mubr.bf16.mxu0 %v1526_v3  ;;  %v857_v54 = vcvt.s32.f32 %v841_v49 }
  0x68   :  { %881 = vmatpush1.bf16.msra.mxu0 %v870_v45  ;;  %v859_v55 = vcvt.s32.f32 %v843_v50  ;;  %v491_v56 = vrot.slane %v1687_v20, %v1607_v19  ;;  %v499_v57 = vrot.slane %v1696_v0, %v1607_v19  ;;  %v824_v59 = vshrl.u32 %v787_v52, %v1601_v14 }
  0x69   :  { %v571_v26 = vpack.c.bf16 %v563_v51, %v561_v48  ;;  %v570_v58 = vpack.c.bf16 %v562_v37, %v560_v36  ;;  %v826_v27 = vshrl.u32 %v795_v53, %v1601_v14  ;;  %v487_v62 = vrot.slane %v1687_v20, %v1605_v18 }
  0x6a   :  { %v869_v60 = vpack.c.bf16 %v859_v55, %v857_v54  ;;  %v525_v34 = vshrl.u32 %v491_v56, %v1601_v14  ;;  %v527_v61 = vshrl.u32 %v499_v57, %v1601_v14  ;;  %v840_v1 = vand.u32 15, %v824_v59 }
  0x6b   :  { %585 = vmatprep.subr.bf16.mxu1 %v571_v26  ;;  %v842_v28 = vand.u32 15, %v826_v27  ;;  %v495_v2 = vrot.slane %v1696_v0, %v1605_v18  ;;  %v718_v4 = vcombine.high %v1626_v29, %v1626_v29  ;;  %v524_v11 = vshrl.u32 %v487_v62, %v1601_v14 }
  0x6c   :  { %586 = vmatpush1.bf16.msra.mxu1 %v570_v58  ;;  %882 = vmatprep.subr.bf16.mxu0 %v869_v60  ;;  %v541_v5 = vand.u32 15, %v525_v34  ;;  %v543_v10 = vand.u32 15, %v527_v61  ;;  %v1742_v12 = vrot.slane %v1626_v29, %v1589_v6  ;;  %v856_v20 = vcvt.s32.f32 %v840_v1 }
  0x6d   :  { %v858_v13 = vcvt.s32.f32 %v842_v28  ;;  %v526_v15 = vshrl.u32 %v495_v2, %v1601_v14  ;;  %v1746_v16 = vrot.slane %v718_v4, %v1589_v6  ;;  %v540_v21 = vand.u32 15, %v524_v11 }
  0x6e   :  { %v557_v0 = vcvt.s32.f32 %v541_v5  ;;  %v559_v17 = vcvt.s32.f32 %v543_v10  ;;  %v748_v22 = vcombine.high %v1742_v12, %v1742_v12  ;;  %v410_v29 = vrot.slane %v1364_v63, %v1589_v6 }
  0x6f   :  { %v868_v23 = vpack.c.bf16 %v858_v13, %v856_v20  ;;  %v542_v24 = vand.u32 15, %v526_v15  ;;  %v750_v25 = vcombine.high %v1746_v16, %v1746_v16  ;;  %v556_v31 = vcvt.s32.f32 %v540_v21 }
  0x70   :  { %v569_v30 = vpack.c.bf16 %v559_v17, %v557_v0  ;;  %v775_v32 = vrot.slane %v748_v22, %v1607_v19  ;;  %v771_v33 = vrot.slane %v748_v22, %v1605_v18  ;;  %v418_v40 = vcombine.high %v410_v29, %v410_v29 }
  0x71   :  { %883 = vmatpush1.bf16.msra.mxu0 %v868_v23  ;;  %v558_v35 = vcvt.s32.f32 %v542_v24  ;;  %v783_v38 = vrot.slane %v750_v25, %v1607_v19  ;;  %v779_v39 = vrot.slane %v750_v25, %v1605_v18  ;;  %v1760_v43 = vrot.slane %v410_v29, %v1589_v6 }
  0x72   :  { %587 = vmatprep.subr.bf16.mxu1 %v569_v30  ;;  %v821_v41 = vshrl.u32 %v775_v32, %v1601_v14  ;;  %v820_v42 = vshrl.u32 %v771_v33, %v1601_v14  ;;  %v759_v44 = vrot.slane %v1742_v12, %v1607_v19  ;;  %v1767_v48 = vrot.slane %v418_v40, %v1589_v6  ;;  %v1368_v32 = vld [vmem:[#allocation10 + $0x14] ss:$8 sps:$4 sm:$0xff]  }
  0x73   :  { %v568_v45 = vpack.c.bf16 %v558_v35, %v556_v31  ;;  %v823_v46 = vshrl.u32 %v783_v38, %v1601_v14  ;;  %v822_v47 = vshrl.u32 %v779_v39, %v1601_v14  ;;  %v448_v50 = vcombine.high %v1760_v43, %v1760_v43 }
  0x74   :  { %v837_v36 = vand.u32 15, %v821_v41  ;;  %v836_v49 = vand.u32 15, %v820_v42  ;;  %v767_v51 = vrot.slane %v1746_v16, %v1607_v19  ;;  %v450_v53 = vcombine.high %v1767_v48, %v1767_v48 }
  0x75   :  { %588 = vmatpush1.bf16.msra.mxu1 %v568_v45  ;;  %v839_v37 = vand.u32 15, %v823_v46  ;;  %v838_v52 = vand.u32 15, %v822_v47  ;;  %v817_v54 = vshrl.u32 %v759_v44, %v1601_v14  ;;  %v475_v57 = vrot.slane %v448_v50, %v1607_v19 }
  0x76   :  { %v853_v55 = vcvt.s32.f32 %v837_v36  ;;  %v852_v56 = vcvt.s32.f32 %v836_v49  ;;  %v471_v26 = vrot.slane %v448_v50, %v1605_v18  ;;  %v483_v27 = vrot.slane %v450_v53, %v1607_v19 }
  0x77   :  { %v855_v58 = vcvt.s32.f32 %v839_v37  ;;  %v854_v59 = vcvt.s32.f32 %v838_v52  ;;  %v479_v60 = vrot.slane %v450_v53, %v1605_v18  ;;  %v521_v34 = vshrl.u32 %v475_v57, %v1601_v14 }
  0x78   :  { %v520_v61 = vshrl.u32 %v471_v26, %v1601_v14  ;;  %v819_v62 = vshrl.u32 %v767_v51, %v1601_v14  ;;  %v833_v63 = vand.u32 15, %v817_v54  ;;  %v523_v2 = vshrl.u32 %v483_v27, %v1601_v14 }
  0x79   :  { %v867_v1 = vpack.c.bf16 %v855_v58, %v853_v55  ;;  %v866_v28 = vpack.c.bf16 %v854_v59, %v852_v56  ;;  %v522_v4 = vshrl.u32 %v479_v60, %v1601_v14  ;;  %v537_v5 = vand.u32 15, %v521_v34 }
  0x7a   :  { %v536_v10 = vand.u32 15, %v520_v61  ;;  %v835_v11 = vand.u32 15, %v819_v62  ;;  %v849_v20 = vcvt.s32.f32 %v833_v63  ;;  %v539_v13 = vand.u32 15, %v523_v2 }
  0x7b   :  { %884 = vmatprep.subr.bf16.mxu0 %v867_v1  ;;  %v538_v15 = vand.u32 15, %v522_v4  ;;  %v755_v0 = vrot.slane %v1742_v12, %v1605_v18  ;;  %v763_v17 = vrot.slane %v1746_v16, %v1605_v18  ;;  %v553_v21 = vcvt.s32.f32 %v537_v5 }
  0x7c   :  { %885 = vmatpush1.bf16.msra.mxu0 %v866_v28  ;;  %v552_v22 = vcvt.s32.f32 %v536_v10  ;;  %v851_v23 = vcvt.s32.f32 %v835_v11  ;;  %v459_v24 = vrot.slane %v1760_v43, %v1607_v19  ;;  %v555_v25 = vcvt.s32.f32 %v539_v13  ;;  %v1370_v11 = vld [vmem:[#allocation10 + $0x10] ss:$8 sps:$4 sm:$0xff]  }
  0x7d   :  { %v554_v29 = vcvt.s32.f32 %v538_v15  ;;  %v816_v30 = vshrl.u32 %v755_v0, %v1601_v14  ;;  %v818_v31 = vshrl.u32 %v763_v17, %v1601_v14  ;;  %v467_v12 = vrot.slane %v1767_v48, %v1607_v19 }
  0x7e   :  { %v865_v33 = vpack.c.bf16 %v851_v23, %v849_v20  ;;  %v517_v16 = vshrl.u32 %v459_v24, %v1601_v14  ;;  %v455_v35 = vrot.slane %v1760_v43, %v1605_v18  ;;  %v567_v38 = vpack.c.bf16 %v555_v25, %v553_v21 }
  0x7f   :  { %v566_v39 = vpack.c.bf16 %v554_v29, %v552_v22  ;;  %v832_v40 = vand.u32 15, %v816_v30  ;;  %v834_v41 = vand.u32 15, %v818_v31  ;;  %v519_v42 = vshrl.u32 %v467_v12, %v1601_v14 }
  0x80   :  { %886 = vmatprep.subr.bf16.mxu0 %v865_v33  ;;  %v533_v44 = vand.u32 15, %v517_v16  ;;  %v463_v45 = vrot.slane %v1767_v48, %v1605_v18  ;;  %v516_v46 = vshrl.u32 %v455_v35, %v1601_v14  ;;  %589 = vmatprep.subr.bf16.mxu1 %v567_v38  ;;  %v976_v49 = vrot.slane %v1368_v32, %v1589_v6 }
  0x81   :  { %v848_v47 = vcvt.s32.f32 %v832_v40  ;;  %v850_v36 = vcvt.s32.f32 %v834_v41  ;;  %590 = vmatpush1.bf16.msra.mxu1 %v566_v39  ;;  %v535_v43 = vand.u32 15, %v519_v42  ;;  %v347_v61 = vsel %vm298_vm0, %v345_v8, 0.0 }
  0x82   :  { %v549_v50 = vcvt.s32.f32 %v533_v44  ;;  %v518_v51 = vshrl.u32 %v463_v45, %v1601_v14  ;;  %v532_v37 = vand.u32 15, %v516_v46  ;;  %v978_v53 = vcombine.high %v976_v49, %v976_v49  ;;  %348 = vadd.xlane.f32.xlu1 %v347_v61 }
  0x83   :  { %v864_v52 = vpack.c.bf16 %v850_v36, %v848_v47  ;;  %v992_v54 = vrot.slane %v976_v49, %v1589_v6  ;;  %v551_v55 = vcvt.s32.f32 %v535_v43  ;;  %v350_v20 = vsel %vm298_vm0, %v346_v9, 0.0 }
  0x84   :  { %v534_v56 = vand.u32 15, %v518_v51  ;;  %v548_v48 = vcvt.s32.f32 %v532_v37  ;;  %v1006_v57 = vrot.slane %v978_v53, %v1589_v6  ;;  %v969_v8 = vrot.slane %v1370_v11, %v1589_v6 }
  0x85   :  { %887 = vmatpush1.bf16.msra.mxu0 %v864_v52  ;;  %v1008_v26 = vcombine.high %v992_v54, %v992_v54  ;;  %v565_v58 = vpack.c.bf16 %v551_v55, %v549_v50  ;;  %v1050_v17 = vrot.slane %v992_v54, %v1607_v19  ;;  %v1046_v25 = vrot.slane %v992_v54, %v1605_v18 }
  0x86   :  { %v550_v59 = vcvt.s32.f32 %v534_v56  ;;  %v1010_v27 = vcombine.high %v1006_v57, %v1006_v57  ;;  %351 = vadd.xlane.f32.xlu1 %v350_v20  ;;  %v977_v13 = vcombine.high %v969_v8, %v969_v8  ;;  %v985_v15 = vrot.slane %v969_v8, %v1589_v6 }
  0x87   :  { %v1066_v60 = vrot.slane %v1008_v26, %v1607_v19  ;;  %591 = vmatprep.subr.bf16.mxu1 %v565_v58  ;;  %v1062_v21 = vrot.slane %v1008_v26, %v1605_v18  ;;  %v1058_v23 = vrot.slane %v1006_v57, %v1607_v19  ;;  %v1084_v9 = vshrl.u32 %v1050_v17, %v1601_v14 }
  0x88   :  { %v564_v34 = vpack.c.bf16 %v550_v59, %v548_v48  ;;  %1328 = vmatmul.mubr.msk.bf16.vlgmr.msra.gmra.mxu0 %vm298_vm0, %v1591_v7  ;;  %v1074_v62 = vrot.slane %v1010_v27, %v1607_v19  ;;  %v999_v0 = vrot.slane %v977_v13, %v1589_v6  ;;  %v1070_v22 = vrot.slane %v1010_v27, %v1605_v18 }
  0x89   :  { %v1088_v63 = vshrl.u32 %v1066_v60, %v1601_v14  ;;  %v1007_v24 = vcombine.high %v985_v15, %v985_v15  ;;  %v1087_v29 = vshrl.u32 %v1062_v21, %v1601_v14  ;;  %v1086_v6 = vshrl.u32 %v1058_v23, %v1601_v14 }
  0x8a   :  { %592 = vmatpush1.bf16.msra.mxu1 %v564_v34  ;;  %v1090_v1 = vshrl.u32 %v1074_v62, %v1601_v14  ;;  %v1009_v7 = vcombine.high %v999_v0, %v999_v0  ;;  %v1089_v30 = vshrl.u32 %v1070_v22, %v1601_v14  ;;  %v1054_v31 = vrot.slane %v1006_v57, %v1605_v18 }
  0x8b   :  { %v1104_v28 = vand.u32 15, %v1088_v63  ;;  %v1034_v32 = vrot.slane %v1007_v24, %v1607_v19  ;;  %v1100_v12 = vand.u32 15, %v1084_v9  ;;  %v1083_v16 = vshrl.u32 %v1046_v25, %v1601_v14 }
  0x8c   :  { %v1106_v2 = vand.u32 15, %v1090_v1  ;;  %v1042_v33 = vrot.slane %v1009_v7, %v1607_v19  ;;  %v1103_v35 = vand.u32 15, %v1087_v29  ;;  %v1105_v38 = vand.u32 15, %v1089_v30  ;;  %v361_v30 = vld [vmem:[%s1928_s3] ss:$2 sm:$0x3] }
  0x8d   :  { %v1120_v4 = vcvt.s32.f32 %v1104_v28  ;;  %v1102_v39 = vand.u32 15, %v1086_v6  ;;  %v1085_v40 = vshrl.u32 %v1054_v31, %v1601_v14  ;;  %v1030_v41 = vrot.slane %v1007_v24, %v1605_v18  ;;  %v1327_v6 = vld [vmem:[%s1928_s3 + $0x1] ss:$2 sm:$0x3] }
  0x8e   :  { %v1122_v5 = vcvt.s32.f32 %v1106_v2  ;;  %v1038_v42 = vrot.slane %v1009_v7, %v1605_v18  ;;  %v1080_v44 = vshrl.u32 %v1034_v32, %v1601_v14  ;;  %v1082_v45 = vshrl.u32 %v1042_v33, %v1601_v14  ;;  %v358_v33 = vld [vmem:[#allocation9] ss:$2 sm:$0x3] }
  0x8f   :  { %v1018_v46 = vrot.slane %v985_v15, %v1607_v19  ;;  %v1026_v47 = vrot.slane %v999_v0, %v1607_v19  ;;  %v1116_v36 = vcvt.s32.f32 %v1100_v12  ;;  %v1099_v49 = vand.u32 15, %v1083_v16  ;;  %v643_v16 = vld [vmem:[#allocation9 + $0x1] ss:$2 sm:$0x3] }
  0x90   :  { %v1130_v10 = vpack.c.bf16 %v1122_v5, %v1120_v4  ;;  %v1119_v43 = vcvt.s32.f32 %v1103_v35  ;;  %v1121_v50 = vcvt.s32.f32 %v1105_v38  ;;  %v1118_v51 = vcvt.s32.f32 %v1102_v39 }
  0x91   :  { %v1101_v37 = vand.u32 15, %v1085_v40  ;;  %v1079_v52 = vshrl.u32 %v1030_v41, %v1601_v14  ;;  %v1081_v53 = vshrl.u32 %v1038_v42, %v1601_v14  ;;  %v1014_v54 = vrot.slane %v985_v15, %v1605_v18 }
  0x92   :  { %1139 = vmatprep.subr.bf16.mxu1 %v1130_v10  ;;  %v1022_v55 = vrot.slane %v999_v0, %v1605_v18  ;;  %v1096_v56 = vand.u32 15, %v1080_v44  ;;  %v1098_v48 = vand.u32 15, %v1082_v45  ;;  %v1076_v57 = vshrl.u32 %v1018_v46, %v1601_v14 }
  0x93   :  { %v1078_v26 = vshrl.u32 %v1026_v47, %v1601_v14  ;;  %v1129_v58 = vpack.c.bf16 %v1121_v50, %v1119_v43  ;;  %v1128_v59 = vpack.c.bf16 %v1118_v51, %v1116_v36  ;;  %v1115_v27 = vcvt.s32.f32 %v1099_v49 }
  0x94   :  { %v1117_v60 = vcvt.s32.f32 %v1101_v37  ;;  %v1095_v34 = vand.u32 15, %v1079_v52  ;;  %v1097_v61 = vand.u32 15, %v1081_v53  ;;  %v1075_v62 = vshrl.u32 %v1014_v54, %v1601_v14 }
  0x95   :  { %v1077_v63 = vshrl.u32 %v1022_v55, %v1601_v14  ;;  %v1112_v1 = vcvt.s32.f32 %v1096_v56  ;;  %v1114_v28 = vcvt.s32.f32 %v1098_v48  ;;  %v1092_v2 = vand.u32 15, %v1076_v57 }
  0x96   :  { %v1094_v4 = vand.u32 15, %v1078_v26  ;;  %v1127_v10 = vpack.c.bf16 %v1117_v60, %v1115_v27  ;;  %v1111_v11 = vcvt.s32.f32 %v1095_v34  ;;  %v1113_v20 = vcvt.s32.f32 %v1097_v61 }
  0x97   :  { %v1091_v8 = vand.u32 15, %v1075_v62  ;;  %v1093_v13 = vand.u32 15, %v1077_v63  ;;  %v1126_v15 = vpack.c.bf16 %v1114_v28, %v1112_v1  ;;  %v1108_v0 = vcvt.s32.f32 %v1092_v2 }
  0x98   :  { %v1110_v17 = vcvt.s32.f32 %v1094_v4  ;;  %v1125_v23 = vpack.c.bf16 %v1113_v20, %v1111_v11  ;;  %v362_v31 = vcvt.s32.f32 %v361_v30  ;;  %v646_v32 = vcvt.s32.f32 %v1327_v6  ;;  %v917_v6 = vld [vmem:[%s1930_s5] ss:$2 sm:$0x3] }
  0x99   :  { %v1107_v24 = vcvt.s32.f32 %v1091_v8  ;;  %v1109_v7 = vcvt.s32.f32 %v1093_v13  ;;  %v367_v41 = vrot.slane %v358_v33, %v1605_v18  ;;  %v371_v46 = vrot.slane %v358_v33, %v1607_v19 }
  0x9a   :  { %v1124_v9 = vpack.c.bf16 %v1110_v17, %v1108_v0  ;;  %v378_v38 = vmul.f32 %v362_v31, %v358_v33  ;;  %v662_v39 = vmul.f32 %v646_v32, %v643_v16  ;;  %v651_v49 = vrot.slane %v643_v16, %v1605_v18 }
  0x9b   :  { %v655_v53 = vrot.slane %v643_v16, %v1607_v19  ;;  %v1330_v16 = vld [vmem:[%s1930_s5 + $0x1] ss:$2 sm:$0x3]  ;;  %s1527_s5 = smov [#allocation13]  }
  0x9c   :  { %v383_v44 = vrot.slane %v378_v38, %v1605_v18  ;;  %v667_v45 = vrot.slane %v662_v39, %v1605_v18  ;;  %v387_v47 = vrot.slane %v378_v38, %v1607_v19  ;;  %v671_v43 = vrot.slane %v662_v39, %v1607_v19  ;;  %s1288_s9 = sshll.u32 %s1527_s5, 4  ;;  %s1289_s9 = int_to_ptr.vmem [resolvable:$true] %s1288_s9 }
  0x9d   :  { %s1488_s10 = scalar_lea.vmem %s1289_s9, 256  ;;  %p1493_p12 = scmp.lt.s32.totalorder %s1289_s9, %s1289_s9 }
  0x9e   :  { %p1489_p11 = scmp.ne.s32.totalorder %s1289_s9, %s1488_s10  ;;  %p1494_p13 = scmp.lt.s32.totalorder %s1488_s10, %s1488_s10 }
  0xa0   :  { %p1495_p0 = por %p1494_p13, %p1493_p12 }
  0xa2   :  { %p1496_p1 = pnand %p1495_p0, %p1489_p11 }
  0xb1   :  { %v573_v5 = vpop.permute.xlu0 %572 }
  0xb2   :  { %1326 = vmatmul.mubr.msk.bf16.vlgmr.msra.gmra.mxu1 %vm298_vm0, %v573_v5 }
  0xb3   :  { %1140 = vmatpush1.bf16.msra.mxu1 %v1129_v58  ;;  %1163 = vmatprep.mubr.bf16.mxu1 %v1526_v3  ;;  %v1123_v3 = vpack.c.bf16 %v1109_v7, %v1107_v24 }
  0xb4   :  { %1141 = vmatprep.subr.bf16.mxu1 %v1128_v59 }
  0xb5   :  { %v1355_v14 = vpop.permute.xlu0 %1354 }
  0xb6   :  { %v1357_v21 = vunpack.i.h.bf16 %v1355_v14  ;;  %v1356_v22 = vunpack.i.l.bf16 %v1355_v14 }
  0xb7   :  { %1142 = vmatpush1.bf16.msra.mxu1 %v1127_v10 }
  0xb8   :  { %1143 = vmatprep.subr.bf16.mxu1 %v1126_v15  ;;  %v628_v25 = vsel %vm298_vm0, %v1356_v22, 0.0  ;;  %v631_v29 = vsel %vm298_vm0, %v1357_v21, 0.0 }
  0xb9   :  { %629 = vadd.xlane.f32.xlu0 %v628_v25  ;;  %632 = vadd.xlane.f32.xlu1 %v631_v29  ;;  %v920_v29 = vld [vmem:[#allocation12] ss:$2 sm:$0x3] }
  0xba   :  { %v921_v31 = vcvt.s32.f32 %v920_v29 }
  0xbb   :  { %1144 = vmatpush1.bf16.msra.mxu1 %v1125_v23 }
  0xbc   :  { %1145 = vmatprep.subr.bf16.mxu1 %v1124_v9 }
  0xbf   :  { %1146 = vmatpush1.bf16.msra.mxu1 %v1123_v3  ;;  %v1177_v3 = vld [vmem:[#allocation12 + $0x1] ss:$2 sm:$0x3] }
  0xc0   :  { %v1178_v32 = vcvt.s32.f32 %v1177_v3 }
  0xc2   :  { %1329 = vmatmul.mubr.msk.bf16.vlgmr.msra.gmra.mxu1 %vm298_vm0, %v573_v5 }
 0x10b   :  { %v1860_v12 = vpop.xlane.xlu1 %348 }
 0x10c   :  { %v390_v37 = vmul.f32 %v383_v44, %v1860_v12  ;;  %v391_v55 = vmul.f32 %v387_v47, %v1860_v12 }
 0x10f   :  { %v1862_v40 = vpop.xlane.xlu1 %351 }
 0x110   :  { %v392_v59 = vmul.f32 %v383_v44, %v1862_v40  ;;  %v393_v28 = vmul.f32 %v387_v47, %v1862_v40  ;;  %v937_v44 = vmul.f32 %v921_v31, %v917_v6 }
 0x126   :  { %v336_v35 = vpop.f32.mrf.mxu0 }
 0x127   :  { %v374_v50 = vmul.f32 %v367_v41, %v336_v35 }
 0x128   :  { %v338_v42 = vpop.f32.mrf.mxu0 }
 0x129   :  { %v375_v54 = vmul.f32 %v371_v46, %v338_v42  ;;  %v394_v34 = vsub.f32 %v374_v50, %v390_v37  ;;  %v1183_v50 = vrot.slane %v1330_v16, %v1605_v18  ;;  %v1187_v37 = vrot.slane %v1330_v16, %v1607_v19 }
 0x12a   :  { %v340_v51 = vpop.f32.mrf.mxu0 }
 0x12b   :  { %v376_v58 = vmul.f32 %v367_v41, %v340_v51  ;;  %v395_v2 = vsub.f32 %v375_v54, %v391_v55 }
 0x12c   :  { %v342_v60 = vpop.f32.mrf.mxu0 }
 0x12d   :  { %v377_v1 = vmul.f32 %v371_v46, %v342_v60  ;;  %v396_v8 = vsub.f32 %v376_v58, %v392_v59 }
 0x12f   :  { %v397_v21 = vsub.f32 %v377_v1, %v393_v28 }
 0x142   :  { %v1869_v36 = vpop.xlane.xlu0 %629  ;;  %v1877_v48 = vpop.xlane.xlu1 %632 }
 0x143   :  { %v674_v52 = vmul.f32 %v667_v45, %v1869_v36  ;;  %v675_v26 = vmul.f32 %v671_v43, %v1869_v36  ;;  %v676_v63 = vmul.f32 %v667_v45, %v1877_v48  ;;  %v677_v20 = vmul.f32 %v671_v43, %v1877_v48 }
 0x144   :  { %v1194_v45 = vmul.f32 %v1330_v16, %v1178_v32 }
 0x146   :  { %v1199_v54 = vrot.slane %v1194_v45, %v1605_v18 }
 0x148   :  { %v906_v39 = vpop.f32.mrf.mxu0 }
 0x14a   :  { %v908_v43 = vpop.f32.mrf.mxu0 }
 0x14c   :  { %v910_v58 = vpop.f32.mrf.mxu0 }
 0x14e   :  { %v912_v28 = vpop.f32.mrf.mxu0 }
 0x172   :  { %v611_v56 = vpop.f32.mrf.mxu1 }
 0x173   :  { %v658_v57 = vmul.f32 %v651_v49, %v611_v56  ;;  %v930_v56 = vrot.slane %v917_v6, %v1607_v19 }
 0x174   :  { %v613_v27 = vpop.f32.mrf.mxu1 }
 0x175   :  { %v678_v61 = vsub.f32 %v658_v57, %v674_v52  ;;  %v659_v62 = vmul.f32 %v655_v53, %v613_v27  ;;  %v926_v52 = vrot.slane %v917_v6, %v1605_v18  ;;  %v946_v57 = vrot.slane %v937_v44, %v1607_v19 }
 0x176   :  { %v615_v4 = vpop.f32.mrf.mxu1 }
 0x177   :  { %v1883_v5 = vadd.f32 %v678_v61, %v394_v34  ;;  %v679_v10 = vsub.f32 %v659_v62, %v675_v26  ;;  %v660_v11 = vmul.f32 %v651_v49, %v615_v4  ;;  %v1203_v26 = vrot.slane %v1194_v45, %v1607_v19 }
 0x178   :  { %v617_v13 = vpop.f32.mrf.mxu1  ;;  %v933_v60 = vmul.f32 %v926_v52, %v906_v39  ;;  %v1206_v61 = vmul.f32 %v1199_v54, %v1869_v36 }
 0x179   :  { %v1331_v15 = vmul.f32 -1.442695, %v1883_v5  ;;  %v1887_v0 = vadd.f32 %v679_v10, %v395_v2  ;;  %v680_v17 = vsub.f32 %v660_v11, %v676_v63  ;;  %v661_v14 = vmul.f32 %v655_v53, %v617_v13 }
 0x17a   :  { %v942_v53 = vrot.slane %v937_v44, %v1605_v18  ;;  %v934_v63 = vmul.f32 %v930_v56, %v908_v43  ;;  %v950_v18 = vmul.f32 %v946_v57, %v1860_v12  ;;  %v1207_v1 = vmul.f32 %v1203_v26, %v1869_v36 }
 0x17b   :  { %1372 = vpow2.f32 %v1331_v15  ;;  %v1332_v22 = vmul.f32 -1.442695, %v1887_v0  ;;  %v1890_v23 = vadd.f32 %v680_v17, %v396_v8  ;;  %v681_v24 = vsub.f32 %v661_v14, %v677_v20 }
 0x17c   :  { %v949_v34 = vmul.f32 %v942_v53, %v1860_v12  ;;  %v951_v4 = vmul.f32 %v942_v53, %v1862_v40  ;;  %v935_v13 = vmul.f32 %v926_v52, %v910_v58  ;;  %v952_v15 = vmul.f32 %v946_v57, %v1862_v40 }
 0x17d   :  { %1374 = vpow2.f32 %v1332_v22  ;;  %v1333_v7 = vmul.f32 -1.442695, %v1890_v23  ;;  %v1893_v9 = vadd.f32 %v681_v24, %v397_v21  ;;  %v1208_v17 = vmul.f32 %v1199_v54, %v1877_v48 }
 0x17e   :  { %v953_v8 = vsub.f32 %v933_v60, %v949_v34  ;;  %v954_v14 = vsub.f32 %v934_v63, %v950_v18  ;;  %v936_v21 = vmul.f32 %v930_v56, %v912_v28  ;;  %v1209_v12 = vmul.f32 %v1203_v26, %v1877_v48 }
 0x17f   :  { %1376 = vpow2.f32 %v1333_v7  ;;  %v1334_v25 = vmul.f32 -1.442695, %v1893_v9  ;;  %v955_v6 = vsub.f32 %v935_v13, %v951_v4 }
 0x180   :  { %v956_v31 = vsub.f32 %v936_v21, %v952_v15 }
 0x181   :  { %1378 = vpow2.f32 %v1334_v25 }
 0x182   :  { %v1165_v33 = vpop.f32.mrf.mxu1 }
 0x183   :  { %v1190_v59 = vmul.f32 %v1183_v50, %v1165_v33 }
 0x184   :  { %v1167_v46 = vpop.f32.mrf.mxu1 }
 0x185   :  { %v1191_v27 = vmul.f32 %v1187_v37, %v1167_v46  ;;  %v1210_v2 = vsub.f32 %v1190_v59, %v1206_v61 }
 0x186   :  { %v1169_v55 = vpop.f32.mrf.mxu1 }
 0x187   :  { %v1211_v19 = vsub.f32 %v1191_v27, %v1207_v1  ;;  %v1192_v10 = vmul.f32 %v1183_v50, %v1169_v55  ;;  %v1214_v24 = vadd.f32 %v1210_v2, %v953_v8 }
 0x188   :  { %v1373_v30 = vpop.eup %1372  ;;  %v1171_v62 = vpop.f32.mrf.mxu1 }
 0x189   :  { %v1245_v35 = vadd.f32 1.0, %v1373_v30  ;;  %v1193_v11 = vmul.f32 %v1187_v37, %v1171_v62  ;;  %v1215_v25 = vadd.f32 %v1211_v19, %v954_v14  ;;  %v1212_v29 = vsub.f32 %v1192_v10, %v1208_v17 }
 0x18a   :  { %v1375_v38 = vpop.eup %1374 }
 0x18b   :  { %1380 = vrcp.f32 %v1245_v35  ;;  %v1246_v41 = vadd.f32 1.0, %v1375_v38  ;;  %v1213_v3 = vsub.f32 %v1193_v11, %v1209_v12  ;;  %v1216_v38 = vadd.f32 %v1212_v29, %v955_v6 }
 0x18c   :  { %v1377_v42 = vpop.eup %1376 }
 0x18d   :  { %1382 = vrcp.f32 %v1246_v41  ;;  %v1247_v47 = vadd.f32 1.0, %v1377_v42 }
 0x18e   :  { %v1379_v49 = vpop.eup %1378 }
 0x18f   :  { %1384 = vrcp.f32 %v1247_v47  ;;  %v1248_v51 = vadd.f32 1.0, %v1379_v49 }
 0x191   :  { %1386 = vrcp.f32 %v1248_v51 }
 0x198   :  { %v1381_v20 = vpop.eup %1380 }
 0x199   :  { %v1257_v36 = vmul.f32 %v1381_v20, %v1883_v5  ;;  %v1217_v5 = vadd.f32 %v1213_v3, %v956_v31 }
 0x19a   :  { %v1383_v22 = vpop.eup %1382 }
 0x19b   :  { %v1258_v7 = vmul.f32 %v1383_v22, %v1887_v0  ;;  %v1265_v32 = vmul.f32 %v1257_v36, %v1214_v24 }
 0x19c   :  { %v1385_v30 = vpop.eup %1384 }
 0x19d   :  { %v1266_v40 = vmul.f32 %v1258_v7, %v1215_v25  ;;  %v1259_v33 = vmul.f32 %v1385_v30, %v1890_v23 }
 0x19e   :  { %v1387_v16 = vpop.eup %1386 }
 0x19f   :  { %v1260_v35 = vmul.f32 %v1387_v16, %v1893_v9  ;;  %v1337_v48 = vpack.c.bf16 %v1266_v40, %v1265_v32  ;;  %v1267_v0 = vmul.f32 %v1259_v33, %v1216_v38 }
 0x1a1   :  { %1281 = vst [vmem:[#allocation13] sm:$0xff] %v1337_v48  ;;  %v1268_v39 = vmul.f32 %v1260_v35, %v1217_v5 }
 0x1a3   :  { %v1338_v41 = vpack.c.bf16 %v1268_v39, %v1267_v0 }
 0x1a5   :  { %1282 = vst [vmem:[#allocation13 + $0x8] sm:$0xff] %v1338_v41 }
 0x1a6   :  { %1499 = shalt.err (!%p1496_p1)
}
 0x1a7   :  { %s1528_s11 = smov 128   ;;  %s1529_s12 = smov 8  }
 0x1a8   :  { %1294 = dma.vmem_to_hbm [thread:$0]  %s1289_s9, 256, %s1932_s7, [#allocation6], %s1528_s11, %s1528_s11, %s1529_s12  }
 0x1a9   :  { %1514 = dma.done.wait [#allocation6], 256  }
 0x1aa   :  { %1515 = vsyncadd [#allocation6], 4294967040 }
 0x1ab   :  { %1298 = vsyncpa [#allocation5], 1 }
 0x1ac   :  { %1299 = vsyncpa [#allocation8], 1 }
 0x1ad   :  { %1300 = vsyncpa [#allocation11], 1 }
 0x1ae   :  { %1301 = vsyncpa [#allocation6], 1 }

</bundles_post_ra>
